<compile_context>
chip_gen: v7x
topology: tpu7x:2x2x1
jax: 0.10.0
libtpu: 0.0.40
codegen_flags: <defaults>
</compile_context>

<pallas_src>
import functools

import jax
import jax.numpy as jnp
import numpy as np
from jax.experimental import pallas as pl
from jax.experimental.pallas import tpu as pltpu

STUDENT_HIDDEN_SIZE = 300   # matches reshape(-1, 300) in the reference
KC_EMB_DIM = 768            # matches reshape(-1, 768) in the reference

_NEG_BIG = -1e30            # finite "minus infinity": tanh(_NEG_BIG) == -1.0 exactly


def _round_up(x, m):
    return (x + m - 1) // m * m


def _value_kernel(hw_ref, ew_ref, out_ref, acc_ref, *, num_clusters, cluster_block):
    """Grid = (student_tiles, cluster_blocks); cluster axis is the reduction.

    hw_ref : (ts, 1)      hoisted student projection h @ w_h (resident across c)
    ew_ref : (1, C_pad)   precomputed cluster projections + bias, FULLY VMEM-resident,
                          padded with -1e30 past the true num_clusters
    out_ref: (ts, 1)      per-student mean prediction (written once in the epilogue)
    acc_ref: (ts, 1)      VMEM scratch running sum
    """
    c = pl.program_id(1)

    @pl.when(c == 0)
    def _():
        acc_ref[...] = jnp.zeros_like(acc_ref)

    start = pl.multiple_of(c * cluster_block, cluster_block)
    ew = ew_ref[:, pl.ds(start, cluster_block)]            # (1, tc)   no DMA, just a view
    x = hw_ref[...] + ew                                    # (ts, tc)  lane-dense

    # sum_c sigmoid(x_c) = 0.5*tc + 0.5*sum_c tanh(0.5*x_c)
    # Padded lanes have x ~ -1e30 -> tanh = -1 exactly -> contribute 0 to the sum
    # after adding the 0.5*tc constant, so no mask is needed and the mean below
    # divides by the TRUE cluster count.
    t = jnp.tanh(0.5 * x)                                    # one EUP op per element
    acc_ref[...] += 0.5 * cluster_block + 0.5 * jnp.sum(t, axis=-1, keepdims=True)

    @pl.when(c == pl.num_programs(1) - 1)
    def _():
        out_ref[...] = acc_ref[...] * (1.0 / num_clusters)


def calculate_value(student_hidden, w_h, ew_biased, num_clusters, *,
                    student_block=None, cluster_block=None):
    """Pallas analog of AllKCValueCriticDKT._calculate_value.

    student_hidden : (S, 300) float32
    w_h            : (300, 1) float32
    ew_biased      : (C,)     float32  -- precomputed cluster_embs @ w_e + b
    Returns mean prediction per student, shape (S,) float32.
    """
    S, Dh = student_hidden.shape
    C = int(num_clusters)
    assert Dh == STUDENT_HIDDEN_SIZE

    # Hoist the grid-invariant student projection out of the kernel (300:1 reduction).
    hw = student_hidden.astype(jnp.float32) @ w_h.astype(jnp.float32)   # (S, 1)

    # --- student tiling (sublane axis) ---
    if student_block is None:
        ts = min(_round_up(max(S, 1), 8), 256)
    else:
        ts = _round_up(int(student_block), 8)
    S_pad = _round_up(S, ts)

    # --- cluster tiling (lane axis, multiple of 128, decoupled from cluster_batch_size) ---
    C_pad128 = _round_up(C, 128)
    if cluster_block is None:
        temps_budget = 9 * 1024 * 1024                      # ~3 live f32 (ts, tc) temps
        max_tc = max(128, (temps_budget // (3 * 4 * ts)) // 128 * 128)
        tc = min(C_pad128, max_tc, 16384)
    else:
        tc = min(_round_up(int(cluster_block), 128), C_pad128)
    C_pad = _round_up(C, tc)

    hw_pad = jnp.pad(hw, ((0, S_pad - S), (0, 0)))
    # Pad ew with a huge negative value: sigmoid -> 0 / tanh -> -1 exactly, so padded
    # lanes contribute nothing (see kernel) and no per-step mask is needed.
    ew_pad = jnp.pad(ew_biased.astype(jnp.float32).reshape(1, C),
                     ((0, 0), (0, C_pad - C)), constant_values=_NEG_BIG)

    kernel = functools.partial(_value_kernel, num_clusters=C, cluster_block=tc)

    out = pl.pallas_call(
        kernel,
        out_shape=jax.ShapeDtypeStruct((S_pad, 1), jnp.float32),
        grid_spec=pltpu.PrefetchScalarGridSpec(
            num_scalar_prefetch=0,
            grid=(S_pad // ts, C_pad // tc),
            in_specs=[
                pl.BlockSpec((ts, 1), lambda s, c: (s, 0)),      # hw tile (resident over c)
                pl.BlockSpec((1, C_pad), lambda s, c: (0, 0)),   # full ew, VMEM-resident
            ],
            out_specs=pl.BlockSpec((ts, 1), lambda s, c: (s, 0)),
            scratch_shapes=[pltpu.VMEM((ts, 1), jnp.float32)],
        ),
        compiler_params=pltpu.CompilerParams(
            dimension_semantics=("parallel", "arbitrary"),
            vmem_limit_bytes=32 * 1024 * 1024),
    )(hw_pad, ew_pad)
    return out[:S, 0]  # (S,)


class AllKCValueCriticDKTPallas:
    """Mirror of AllKCValueCriticDKT with deterministic synthetic DKT weights."""

    def __init__(self, cluster_embs, student_hidden_size=STUDENT_HIDDEN_SIZE,
                 reward_scale=1000, cluster_batch_size=512, seed=0):
        if cluster_embs is None:
            raise ValueError(
                "cluster_embs cannot be empty to use AllKCValueCriticDKT model")
        self.cluster_embs = jnp.asarray(cluster_embs, jnp.float32)
        self.student_hidden_size = student_hidden_size
        self.reward_scale = reward_scale            # unused in forward (as in reference)
        self.cluster_batch_size = cluster_batch_size  # kept for API parity; the TPU
        # kernel's cluster tile is chosen independently (mathematically identical mean).
        self.num_clusters = self.cluster_embs.shape[0]

        # Deterministic "pretrained" prediction-layer parameters.
        kh, ke, kb = jax.random.split(jax.random.PRNGKey(seed), 3)
        self.w_h = (jax.random.normal(kh, (student_hidden_size, 1), jnp.float32)
                    * 0.05)
        self.w_e = jax.random.normal(ke, (KC_EMB_DIM, 1), jnp.float32) * 0.05
        self.b = jax.random.normal(kb, (1, 1), jnp.float32) * 0.1

        # Precompute the per-cluster projection + bias ONCE: cluster_embs and w_e are
        # constants, so the (C, 768) table never needs to be read during forward.
        self.ew_biased = (self.cluster_embs @ self.w_e)[:, 0] + self.b[0, 0]  # (C,)

    def _process_info(self, info):
        for k in ("y_kc_before", "y_que", "cell_state"):
            if k not in info:
                raise ValueError(f"{k} is not found in info")
        return (jnp.asarray(info["y_kc_before"], jnp.float32),
                jnp.asarray(info["y_que"], jnp.float32),
                jnp.asarray(info["cell_state"], jnp.float32))

    def forward(self, obs, info=None):
        info = {} if info is None else info
        student_hidden_state = jnp.asarray(obs, jnp.float32)
        _ = self._process_info(info)   # validated but unused, same as reference
        return calculate_value(student_hidden_state, self.w_h, self.ew_biased,
                               self.num_clusters)


if __name__ == "__main__":
    key = jax.random.PRNGKey(0)
    k_obs, k_emb, k_kc, k_que, k_cell = jax.random.split(key, 5)

    num_students = 4
    num_clusters = 500      # deliberately NOT a multiple of 128 -> exercises padding

    obs = jax.random.normal(k_obs, (num_students, STUDENT_HIDDEN_SIZE), jnp.float32)
    cluster_embs = jax.random.normal(k_emb, (num_clusters, KC_EMB_DIM),
                                     jnp.float32) * 0.1
    info = {
        "y_kc_before": jax.random.uniform(k_kc, (num_students, 16)),
        "y_que": jax.random.uniform(k_que, (num_students, 16)),
        "cell_state": jax.random.normal(k_cell,
                                        (num_students, STUDENT_HIDDEN_SIZE)),
    }

    model = AllKCValueCriticDKTPallas(cluster_embs, cluster_batch_size=128, seed=0)

    value = jax.block_until_ready(model.forward(obs, info))

    # Pure-JAX reference of the same math (sigmoid form).
    ref_logits = (obs @ model.w_h) + (cluster_embs @ model.w_e).T + model.b[0, 0]
    ref = jax.nn.sigmoid(ref_logits).mean(axis=1)
    # Slightly looser tolerance: kernel uses the exact identity
    # sigmoid(x) = 0.5 + 0.5*tanh(x/2) but TPU's tanh/exp approximations differ a hair.
    np.testing.assert_allclose(np.asarray(value), np.asarray(ref),
                               rtol=1e-4, atol=1e-4)

    # Also exercise a multi-block reduction path (several cluster grid steps).
    value_small_blocks = jax.block_until_ready(
        calculate_value(obs, model.w_h, model.ew_biased, model.num_clusters,
                        cluster_block=128))
    np.testing.assert_allclose(np.asarray(value_small_blocks), np.asarray(ref),
                               rtol=1e-4, atol=1e-4)

    print("KERNEL_OK")
</pallas_src>

<mosaic_0001>
module attributes {stable_mosaic.version = 11 : i64} {
  func.func @_value_kernel(%arg0: i32, %arg1: i32, %arg2: memref<8x1xf32, #tpu.memory_space<vmem>>, %arg3: memref<1x512xf32, #tpu.memory_space<vmem>>, %arg4: memref<8x1xf32, #tpu.memory_space<vmem>>, %arg5: memref<8x1xf32, #tpu.memory_space<vmem>>) attributes {dimension_semantics = [#tpu.dimension_semantics<parallel>, #tpu.dimension_semantics<arbitrary>], iteration_bounds = array<i64: 1, 1>, scalar_prefetch = 0 : i64, scratch_operands = 1 : i64, tpu.core_type = #tpu.core_type<tc>, window_params = [{transform_indices = @transform_0, window_bounds = array<i64: 8, 1>}, {pipeline_mode = #tpu.pipeline_mode<synchronous>, transform_indices = @transform_1, window_bounds = array<i64: 1, 512>}, {transform_indices = @transform_2, window_bounds = array<i64: 8, 1>}]} {
    %c0_i32 = arith.constant 0 : i32
    %0 = arith.cmpi eq, %arg1, %c0_i32 : i32
    %1 = arith.extui %0 : i1 to i32
    %c0_i32_0 = arith.constant 0 : i32
    %2 = arith.cmpi ne, %1, %c0_i32_0 : i32
    scf.if %2 {
      %cst_12 = arith.constant 0.000000e+00 : f32
      %26 = vector.broadcast %cst_12 : f32 to vector<8x1xf32>
      %c0_13 = arith.constant 0 : index
      %c0_14 = arith.constant 0 : index
      %27 = vector.load %arg5[%c0_13, %c0_14] : memref<8x1xf32, #tpu.memory_space<vmem>>, vector<8x1xf32>
      tpu.vector_store %arg5[%c0_13, %c0_14], %26 {strides = array<i32>} : memref<8x1xf32, #tpu.memory_space<vmem>>, vector<8x1xf32>,
    } else {
    }
    %c512_i32 = arith.constant 512 : i32
    %3 = arith.muli %arg1, %c512_i32 : i32
    %4 = tpu.assume_multiple %3, 512 : i32
    %c0 = arith.constant 0 : index
    %5 = arith.index_cast %4 : i32 to index
    %6 = vector.load %arg3[%c0, %5] : memref<1x512xf32, #tpu.memory_space<vmem>>, vector<1x512xf32>
    %c0_1 = arith.constant 0 : index
    %c0_2 = arith.constant 0 : index
    %7 = vector.load %arg2[%c0_1, %c0_2] : memref<8x1xf32, #tpu.memory_space<vmem>>, vector<8x1xf32>
    %8 = vector.broadcast %7 : vector<8x1xf32> to vector<8x512xf32>
    %9 = vector.broadcast %6 : vector<1x512xf32> to vector<8x512xf32>
    %10 = arith.addf %8, %9 : vector<8x512xf32>
    %cst = arith.constant 5.000000e-01 : f32
    %11 = vector.broadcast %cst : f32 to vector<8x512xf32>
    %12 = arith.mulf %11, %10 : vector<8x512xf32>
    %13 = math.tanh %12 : vector<8x512xf32>
    %c0_3 = arith.constant 0 : index
    %c0_4 = arith.constant 0 : index
    %14 = vector.load %arg5[%c0_3, %c0_4] : memref<8x1xf32, #tpu.memory_space<vmem>>, vector<8x1xf32>
    %cst_5 = arith.constant dense<0.000000e+00> : vector<8xf32>
    %15 = vector.multi_reduction <add>, %13, %cst_5 [1] : vector<8x512xf32> to vector<8xf32>
    %16 = vector.shape_cast %15 : vector<8xf32> to vector<8x1xf32>
    %cst_6 = arith.constant 5.000000e-01 : f32
    %17 = vector.broadcast %cst_6 : f32 to vector<8x1xf32>
    %18 = arith.mulf %17, %16 : vector<8x1xf32>
    %cst_7 = arith.constant 2.560000e+02 : f32
    %19 = vector.broadcast %cst_7 : f32 to vector<8x1xf32>
    %20 = arith.addf %19, %18 : vector<8x1xf32>
    %21 = arith.addf %14, %20 : vector<8x1xf32>
    %c0_8 = arith.constant 0 : index
    %c0_9 = arith.constant 0 : index
    %22 = vector.load %arg5[%c0_8, %c0_9] : memref<8x1xf32, #tpu.memory_space<vmem>>, vector<8x1xf32>
    tpu.vector_store %arg5[%c0_8, %c0_9], %21 {strides = array<i32>} : memref<8x1xf32, #tpu.memory_space<vmem>>, vector<8x1xf32>,
    %c0_i32_10 = arith.constant 0 : i32
    %23 = arith.cmpi eq, %arg1, %c0_i32_10 : i32
    %24 = arith.extui %23 : i1 to i32
    %c0_i32_11 = arith.constant 0 : i32
    %25 = arith.cmpi ne, %24, %c0_i32_11 : i32
    scf.if %25 {
      %c0_12 = arith.constant 0 : index
      %c0_13 = arith.constant 0 : index
      %26 = vector.load %arg5[%c0_12, %c0_13] : memref<8x1xf32, #tpu.memory_space<vmem>>, vector<8x1xf32>
      %cst_14 = arith.constant 2.000000e-03 : f32
      %27 = vector.broadcast %cst_14 : f32 to vector<8x1xf32>
      %28 = arith.mulf %26, %27 : vector<8x1xf32>
      %c0_15 = arith.constant 0 : index
      %c0_16 = arith.constant 0 : index
      %29 = vector.load %arg4[%c0_15, %c0_16] : memref<8x1xf32, #tpu.memory_space<vmem>>, vector<8x1xf32>
      tpu.vector_store %arg4[%c0_15, %c0_16], %28 {strides = array<i32>} : memref<8x1xf32, #tpu.memory_space<vmem>>, vector<8x1xf32>,
    } else {
    }
    return
  }
  func.func @transform_0(%arg0: i32, %arg1: i32) -> (i32, i32) {
    %c0_i32 = arith.constant 0 : i32
    %c0_i32_0 = arith.constant 0 : i32
    return %arg0, %c0_i32 : i32, i32
  }
  func.func @transform_1(%arg0: i32, %arg1: i32) -> (i32, i32) {
    %c0_i32 = arith.constant 0 : i32
    %c0_i32_0 = arith.constant 0 : i32
    %c0_i32_1 = arith.constant 0 : i32
    return %c0_i32, %c0_i32_0 : i32, i32
  }
  func.func @transform_2(%arg0: i32, %arg1: i32) -> (i32, i32) {
    %c0_i32 = arith.constant 0 : i32
    %c0_i32_0 = arith.constant 0 : i32
    return %arg0, %c0_i32 : i32, i32
  }
}

</mosaic_0001>

<bundles_post_ra>
// kernel: tpu_custom_call.1
= control target key start
LH: loop header
LB: loop body
LE: loop exit
PB: predicated region body
PF: predicated region fallthrough
CT: control target
= control target key end

     0   :  { %v94_v0 = vmov 0   ;;  %vm15_vm0 = vcmask 7168   ;;  %v95_v2 = vmov 0.0   ;;  %v29_v3 = vlaneseq  ;;  %s123_s0 = inlined_call_operand.vmem [shape: f32[8,1], index: 0, kind: input, shape index: {}]   ;;  %s124_s1 = inlined_call_operand.vmem [shape: f32[1,512], index: 1, kind: input, shape index: {}]   ;;  %s125_s2 = inlined_call_operand.vmem [shape: f32[8,1], index: 2, kind: output, shape index: {}]  }
   0x1   :  { %85 = vset.pattern.permute.xlu0 %v94_v0  ;;  %v22_v1 = vld [vmem:[%s123_s0] sm:$0xff]  ;;  %16 = vst.msk [vmem:[#allocation2] sm:$0xff] %vm15_vm0, %v95_v2 }
   0x2   :  { %25 = vperm.xlu0 %85, %v22_v1   ;;  %v30_v4 = vshrl.u32 %v29_v3, 7  ;;  %v21_v8 = vld [vmem:[%s124_s1] sm:$0xf] }
   0x4   :  { %v31_v5 = vsub.s32 0, %v30_v4  ;;  %v35_v6 = vsub.s32 1, %v30_v4  ;;  %v39_v7 = vsub.s32 2, %v30_v4  ;;  %v43_v9 = vsub.s32 3, %v30_v4 }
   0x6   :  { %v32_v10 = vrot.slane %v21_v8, %v31_v5  ;;  %v36_v11 = vrot.slane %v21_v8, %v35_v6  ;;  %v40_v12 = vrot.slane %v21_v8, %v39_v7  ;;  %v44_v13 = vrot.slane %v21_v8, %v43_v9 }
   0x8   :  { %v61_v32 = vld [vmem:[#allocation2] sm:$0xff] }
  0x81   :  { %v26_v14 = vpop.permute.xlu0 %25 }
  0x82   :  { %v49_v15 = vadd.f32 %v32_v10, %v26_v14  ;;  %v50_v16 = vadd.f32 %v36_v11, %v26_v14  ;;  %v51_v17 = vadd.f32 %v40_v12, %v26_v14  ;;  %v52_v18 = vadd.f32 %v44_v13, %v26_v14 }
  0x84   :  { %v53_v19 = vmul.f32 0.5, %v49_v15  ;;  %v54_v20 = vmul.f32 0.5, %v50_v16  ;;  %v55_v21 = vmul.f32 0.5, %v51_v17  ;;  %v56_v22 = vmul.f32 0.5, %v52_v18 }
  0x86   :  { %86 = vtanh.f32 %v53_v19 }
  0x87   :  { %88 = vtanh.f32 %v54_v20 }
  0x88   :  { %90 = vtanh.f32 %v55_v21 }
  0x89   :  { %92 = vtanh.f32 %v56_v22 }
  0x90   :  { %v87_v23 = vpop.eup %86 }
  0x91   :  { %v89_v24 = vpop.eup %88 }
  0x92   :  { %v62_v25 = vadd.f32 %v89_v24, %v87_v23  ;;  %v91_v26 = vpop.eup %90 }
  0x93   :  { %v93_v28 = vpop.eup %92 }
  0x94   :  { %v63_v27 = vadd.f32 %v91_v26, %v62_v25 }
  0x96   :  { %v64_v29 = vadd.f32 %v93_v28, %v63_v27 }
  0x98   :  { %65 = vadd.xlane.f32.xlu0 %v64_v29 }
 0x125   :  { %v66_v30 = vpop.xlane.xlu0 %65 }
 0x126   :  { %v67_v31 = vmul.f32 0.5, %v66_v30 }
 0x128   :  { %v68_v33 = vadd.f32 256.0, %v67_v31 }
 0x12a   :  { %v69_v34 = vadd.f32 %v68_v33, %v61_v32 }
 0x12c   :  { %71 = vst.msk [vmem:[#allocation2] sm:$0xff] %vm15_vm0, %v69_v34 }
 0x133   :  { %v75_v35 = vld [vmem:[#allocation2] sm:$0xff] }
 0x134   :  { %v76_v36 = vmul.f32 0.002, %v75_v35 }
 0x136   :  { %77 = vst.msk [vmem:[%s125_s2] sm:$0xff] %vm15_vm0, %v76_v36 }

</bundles_post_ra>
